<compile_context>
chip_gen: v7x
topology: tpu7x:2x2x1
jax: 0.10.0
libtpu: 0.0.40
codegen_flags: <defaults>
</compile_context>

<pallas_src>
import functools

import jax
import jax.numpy as jnp
from jax.experimental import pallas as pl
from jax.experimental.pallas import tpu as pltpu

IGNORE_INDEX = 255
IGNORE_REMAP = 19        # targets[targets == ignore_index] = 19 (dropped when C <= 19)
SMOOTH = 1e-08


def _cdiv(a, b):
    return -(-a // b)


def _round_up(a, b):
    return _cdiv(a, b) * b


def _dice_sums_kernel(x_ref, t_ref, out_ref, acc_ref, *, hw, tile, steps, need_mask):
    # grid = (N, parallel_chunks, steps); last axis is the spatial reduction.
    s = pl.program_id(2)

    @pl.when(s == 0)
    def _():
        acc_ref[...] = jnp.zeros_like(acc_ref)

    x = x_ref[0].astype(jnp.float32)                      # (C, T) logits
    m = jnp.max(x, axis=0, keepdims=True)                 # (1, T)
    e = jnp.exp(x - m)
    # One reciprocal per column (EUP slot) + one VPU multiply per element,
    # instead of C divides per pixel. approx=False keeps 1e-5 tolerance.
    inv = pl.reciprocal(jnp.sum(e, axis=0, keepdims=True), approx=False)
    p = e * inv                                           # softmax over channels (dim=1)

    t = t_ref[0]                                          # (1, T) int32 labels
    t_mod = jnp.where(t == IGNORE_INDEX, IGNORE_REMAP, t)
    c_ids = jax.lax.broadcasted_iota(jnp.int32, p.shape, 0)
    # one-hot over classes [0, C): classes >= C (incl. remapped ignore and the
    # spatial-padding label C) drop out, matching one_hot(C+1)[:, :C].
    oh = c_ids == t_mod                                   # (C, T) bool

    if need_mask:
        # Zero contributions from lanes past the true HW (spatial padding).
        base = (pl.program_id(1) * steps + s) * tile
        lane = jax.lax.broadcasted_iota(jnp.int32, (1, tile), 1) + base
        p = jnp.where(lane < hw, p, 0.0)

    # Element-wise accumulation only (VPU); no per-step XLU reduction/store.
    acc_ref[0] += jnp.where(oh, p, 0.0)                   # p * one_hot
    acc_ref[1] += p * p
    acc_ref[2] += oh.astype(jnp.float32)                  # one_hot (oh*oh == oh)

    @pl.when(s == pl.num_programs(2) - 1)
    def _():
        # Single lane-reduction + single (3, C) store per (batch, chunk).
        out_ref[...] = jnp.sum(acc_ref[...], axis=-1)[None, None, :, :]


def dice_loss(inputs, targets, smooth=SMOOTH, spatial_tile=4096, parallel_chunks=2):
    N, C, H, W = inputs.shape
    HW = H * W

    # Tile / chunk selection: lane-aligned (multiple of 128), capped so tiny
    # inputs don't over-pad, large enough that big inputs stay HBM-roofline
    # friendly. parallel_chunks splits the spatial axis into extra "parallel"
    # grid work so both TCs are busy on v7x even when N == 1.
    parallel_chunks = max(1, min(parallel_chunks, _cdiv(HW, 128)))
    tile = min(spatial_tile, _round_up(_cdiv(HW, parallel_chunks), 128))
    tile = max(128, _round_up(tile, 128))
    steps = _cdiv(HW, tile * parallel_chunks)
    hw_pad = steps * tile * parallel_chunks
    need_mask = hw_pad != HW

    # No wrapper-side dtype cast: keep logits in their native dtype (e.g. bf16)
    # and cast inside the kernel to avoid an extra HBM read+write pass.
    x = inputs.reshape(N, C, HW)
    t = targets.reshape(N, 1, HW).astype(jnp.int32)
    if need_mask:
        pad = hw_pad - HW
        x = jnp.pad(x, ((0, 0), (0, 0), (0, pad)))
        # pad label = C -> always outside [0, C) after remap, so one-hot drops it.
        t = jnp.pad(t, ((0, 0), (0, 0), (0, pad)), constant_values=C)

    grid = (N, parallel_chunks, steps)
    kernel = functools.partial(
        _dice_sums_kernel, hw=HW, tile=tile, steps=steps, need_mask=need_mask)

    sums = pl.pallas_call(
        kernel,
        out_shape=jax.ShapeDtypeStruct((N, parallel_chunks, 3, C), jnp.float32),
        grid_spec=pltpu.PrefetchScalarGridSpec(
            num_scalar_prefetch=0,
            grid=grid,
            in_specs=[
                pl.BlockSpec((1, C, tile), lambda n, p, s: (n, 0, p * steps + s)),
                pl.BlockSpec((1, 1, tile), lambda n, p, s: (n, 0, p * steps + s)),
            ],
            out_specs=pl.BlockSpec((1, 1, 3, C), lambda n, p, s: (n, p, 0, 0)),
            scratch_shapes=[pltpu.VMEM((3, C, tile), jnp.float32)],
        ),
        compiler_params=pltpu.CompilerParams(
            dimension_semantics=("parallel", "parallel", "arbitrary"),
            vmem_limit_bytes=64 << 20,
        ),
    )(x, t)

    sums = sums.sum(axis=1)                                # sum over parallel chunks
    inter = sums[:, 0]                                     # (N, C)
    union = sums[:, 1] + sums[:, 2]                        # (N, C)
    dice_score = 2.0 * inter / (union + smooth)
    return 1.0 - dice_score.mean()


def dice_loss_ref(inputs, targets, smooth=SMOOTH):
    # pure-JAX reference mirroring the PyTorch module
    N, C, H, W = inputs.shape
    p = jax.nn.softmax(inputs.astype(jnp.float32), axis=1)
    t_mod = jnp.where(targets == IGNORE_INDEX, IGNORE_REMAP, targets)
    oh = jax.nn.one_hot(t_mod, C + 1, dtype=jnp.float32)   # (N, H, W, C+1)
    oh = jnp.transpose(oh, (0, 3, 1, 2))[:, :C]            # (N, C, H, W)
    inter = (p * oh).sum(axis=(2, 3))
    union = (p * p).sum(axis=(2, 3)) + (oh * oh).sum(axis=(2, 3))
    dice = 2.0 * inter / (union + smooth)
    return 1.0 - dice.mean()


if __name__ == "__main__":
    key = jax.random.PRNGKey(0)
    k1, k2, k3 = jax.random.split(key, 3)
    # Cityscapes-like: 19 classes (ignore label 255 remaps to dropped class 19)
    N, C, H, W = 2, 19, 16, 16
    inputs = jax.random.normal(k1, (N, C, H, W), dtype=jnp.float32)
    targets = jax.random.randint(k2, (N, H, W), 0, C, dtype=jnp.int32)
    ignore_mask = jax.random.bernoulli(k3, 0.1, (N, H, W))
    targets = jnp.where(ignore_mask, IGNORE_INDEX, targets)

    loss = jax.block_until_ready(dice_loss(inputs, targets))
    ref = dice_loss_ref(inputs, targets)
    assert jnp.allclose(loss, ref, atol=1e-5, rtol=1e-5), (loss, ref)

    # also exercise the padded/masked path (HW not a multiple of the tile grid)
    H2, W2 = 15, 13
    inputs2 = jax.random.normal(k1, (1, C, H2, W2), dtype=jnp.float32)
    targets2 = jax.random.randint(k2, (1, H2, W2), 0, C, dtype=jnp.int32)
    loss2 = jax.block_until_ready(dice_loss(inputs2, targets2))
    ref2 = dice_loss_ref(inputs2, targets2)
    assert jnp.allclose(loss2, ref2, atol=1e-5, rtol=1e-5), (loss2, ref2)

    print("KERNEL_OK")
</pallas_src>

<mosaic_0001>
module attributes {stable_mosaic.version = 11 : i64} {
  func.func @_dice_sums_kernel(%arg0: i32, %arg1: i32, %arg2: i32, %arg3: memref<1x19x128xf32, #tpu.memory_space<vmem>>, %arg4: memref<1x1x128xi32, #tpu.memory_space<vmem>>, %arg5: memref<1x1x3x19xf32, #tpu.memory_space<vmem>>, %arg6: memref<3x19x128xf32, #tpu.memory_space<vmem>>) attributes {dimension_semantics = [#tpu.dimension_semantics<parallel>, #tpu.dimension_semantics<parallel>, #tpu.dimension_semantics<arbitrary>], iteration_bounds = array<i64: 2, 2, 1>, scalar_prefetch = 0 : i64, scratch_operands = 1 : i64, tpu.core_type = #tpu.core_type<tc>, window_params = [{transform_indices = @transform_0, window_bounds = array<i64: 1, 19, 128>}, {transform_indices = @transform_1, window_bounds = array<i64: 1, 1, 128>}, {transform_indices = @transform_2, window_bounds = array<i64: 1, 1, 3, 19>}]} {
    %c0_i32 = arith.constant 0 : i32
    %0 = arith.cmpi eq, %arg2, %c0_i32 : i32
    %1 = arith.extui %0 : i1 to i32
    %c0_i32_0 = arith.constant 0 : i32
    %2 = arith.cmpi ne, %1, %c0_i32_0 : i32
    scf.if %2 {
      %cst_26 = arith.constant 0.000000e+00 : f32
      %50 = vector.broadcast %cst_26 : f32 to vector<3x19x128xf32>
      %c0_27 = arith.constant 0 : index
      %c0_28 = arith.constant 0 : index
      %c0_29 = arith.constant 0 : index
      %51 = vector.load %arg6[%c0_27, %c0_28, %c0_29] : memref<3x19x128xf32, #tpu.memory_space<vmem>>, vector<3x19x128xf32>
      tpu.vector_store %arg6[%c0_27, %c0_28, %c0_29], %50 {strides = array<i32>} : memref<3x19x128xf32, #tpu.memory_space<vmem>>, vector<3x19x128xf32>,
    } else {
    }
    %c0 = arith.constant 0 : index
    %c0_1 = arith.constant 0 : index
    %c0_2 = arith.constant 0 : index
    %3 = vector.load %arg3[%c0, %c0_1, %c0_2] : memref<1x19x128xf32, #tpu.memory_space<vmem>>, vector<1x19x128xf32>
    %4 = vector.shape_cast %3 : vector<1x19x128xf32> to vector<19x128xf32>
    %cst = arith.constant dense<0xFF800000> : vector<128xf32>
    %5 = vector.multi_reduction <maximumf>, %4, %cst [0] : vector<19x128xf32> to vector<128xf32>
    %6 = vector.shape_cast %5 : vector<128xf32> to vector<1x128xf32>
    %7 = vector.broadcast %6 : vector<1x128xf32> to vector<19x128xf32>
    %8 = arith.subf %4, %7 : vector<19x128xf32>
    %9 = math.exp %8 : vector<19x128xf32>
    %cst_3 = arith.constant dense<0.000000e+00> : vector<128xf32>
    %10 = vector.multi_reduction <add>, %9, %cst_3 [0] : vector<19x128xf32> to vector<128xf32>
    %11 = vector.shape_cast %10 : vector<128xf32> to vector<1x128xf32>
    %12 = tpu.reciprocal %11 : vector<1x128xf32> -> vector<1x128xf32>
    %13 = vector.broadcast %12 : vector<1x128xf32> to vector<19x128xf32>
    %14 = arith.mulf %9, %13 : vector<19x128xf32>
    %c0_4 = arith.constant 0 : index
    %c0_5 = arith.constant 0 : index
    %c0_6 = arith.constant 0 : index
    %15 = vector.load %arg4[%c0_4, %c0_5, %c0_6] : memref<1x1x128xi32, #tpu.memory_space<vmem>>, vector<1x1x128xi32>
    %16 = vector.shape_cast %15 : vector<1x1x128xi32> to vector<1x128xi32>
    %c255_i32 = arith.constant 255 : i32
    %17 = vector.broadcast %c255_i32 : i32 to vector<1x128xi32>
    %18 = arith.cmpi eq, %16, %17 : vector<1x128xi32>
    %c19_i32 = arith.constant 19 : i32
    %19 = vector.broadcast %c19_i32 : i32 to vector<1x128xi32>
    %20 = arith.select %18, %19, %16 : vector<1x128xi1>, vector<1x128xi32>
    %21 = tpu.iota {dimensions = array<i32: 0>} : vector<19x128xi32>
    %22 = vector.broadcast %20 : vector<1x128xi32> to vector<19x128xi32>
    %23 = arith.cmpi eq, %21, %22 : vector<19x128xi32>
    %c0_7 = arith.constant 0 : index
    %c0_8 = arith.constant 0 : index
    %c0_9 = arith.constant 0 : index
    %24 = vector.load %arg6[%c0_7, %c0_8, %c0_9] : memref<3x19x128xf32, #tpu.memory_space<vmem>>, vector<1x19x128xf32>
    %25 = vector.shape_cast %24 : vector<1x19x128xf32> to vector<19x128xf32>
    %cst_10 = arith.constant 0.000000e+00 : f32
    %26 = vector.broadcast %cst_10 : f32 to vector<19x128xf32>
    %27 = arith.select %23, %14, %26 : vector<19x128xi1>, vector<19x128xf32>
    %28 = arith.addf %25, %27 : vector<19x128xf32>
    %c0_11 = arith.constant 0 : index
    %c0_12 = arith.constant 0 : index
    %c0_13 = arith.constant 0 : index
    %29 = vector.load %arg6[%c0_11, %c0_12, %c0_13] : memref<3x19x128xf32, #tpu.memory_space<vmem>>, vector<1x19x128xf32>
    %30 = vector.shape_cast %29 : vector<1x19x128xf32> to vector<19x128xf32>
    %31 = vector.shape_cast %28 : vector<19x128xf32> to vector<1x19x128xf32>
    tpu.vector_store %arg6[%c0_11, %c0_12, %c0_13], %31 {strides = array<i32>} : memref<3x19x128xf32, #tpu.memory_space<vmem>>, vector<1x19x128xf32>,
    %c1 = arith.constant 1 : index
    %c0_14 = arith.constant 0 : index
    %c0_15 = arith.constant 0 : index
    %32 = vector.load %arg6[%c1, %c0_14, %c0_15] : memref<3x19x128xf32, #tpu.memory_space<vmem>>, vector<1x19x128xf32>
    %33 = vector.shape_cast %32 : vector<1x19x128xf32> to vector<19x128xf32>
    %34 = arith.mulf %14, %14 : vector<19x128xf32>
    %35 = arith.addf %33, %34 : vector<19x128xf32>
    %c1_16 = arith.constant 1 : index
    %c0_17 = arith.constant 0 : index
    %c0_18 = arith.constant 0 : index
    %36 = vector.load %arg6[%c1_16, %c0_17, %c0_18] : memref<3x19x128xf32, #tpu.memory_space<vmem>>, vector<1x19x128xf32>
    %37 = vector.shape_cast %36 : vector<1x19x128xf32> to vector<19x128xf32>
    %38 = vector.shape_cast %35 : vector<19x128xf32> to vector<1x19x128xf32>
    tpu.vector_store %arg6[%c1_16, %c0_17, %c0_18], %38 {strides = array<i32>} : memref<3x19x128xf32, #tpu.memory_space<vmem>>, vector<1x19x128xf32>,
    %c2 = arith.constant 2 : index
    %c0_19 = arith.constant 0 : index
    %c0_20 = arith.constant 0 : index
    %39 = vector.load %arg6[%c2, %c0_19, %c0_20] : memref<3x19x128xf32, #tpu.memory_space<vmem>>, vector<1x19x128xf32>
    %40 = vector.shape_cast %39 : vector<1x19x128xf32> to vector<19x128xf32>
    %41 = arith.extui %23 : vector<19x128xi1> to vector<19x128xi32>
    %42 = arith.sitofp %41 : vector<19x128xi32> to vector<19x128xf32>
    %43 = arith.addf %40, %42 : vector<19x128xf32>
    %c2_21 = arith.constant 2 : index
    %c0_22 = arith.constant 0 : index
    %c0_23 = arith.constant 0 : index
    %44 = vector.load %arg6[%c2_21, %c0_22, %c0_23] : memref<3x19x128xf32, #tpu.memory_space<vmem>>, vector<1x19x128xf32>
    %45 = vector.shape_cast %44 : vector<1x19x128xf32> to vector<19x128xf32>
    %46 = vector.shape_cast %43 : vector<19x128xf32> to vector<1x19x128xf32>
    tpu.vector_store %arg6[%c2_21, %c0_22, %c0_23], %46 {strides = array<i32>} : memref<3x19x128xf32, #tpu.memory_space<vmem>>, vector<1x19x128xf32>,
    %c0_i32_24 = arith.constant 0 : i32
    %47 = arith.cmpi eq, %arg2, %c0_i32_24 : i32
    %48 = arith.extui %47 : i1 to i32
    %c0_i32_25 = arith.constant 0 : i32
    %49 = arith.cmpi ne, %48, %c0_i32_25 : i32
    scf.if %49 {
      %c0_26 = arith.constant 0 : index
      %c0_27 = arith.constant 0 : index
      %c0_28 = arith.constant 0 : index
      %50 = vector.load %arg6[%c0_26, %c0_27, %c0_28] : memref<3x19x128xf32, #tpu.memory_space<vmem>>, vector<3x19x128xf32>
      %cst_29 = arith.constant dense<0.000000e+00> : vector<3x19xf32>
      %51 = vector.multi_reduction <add>, %50, %cst_29 [2] : vector<3x19x128xf32> to vector<3x19xf32>
      %52 = vector.shape_cast %51 : vector<3x19xf32> to vector<1x1x3x19xf32>
      %c0_30 = arith.constant 0 : index
      %c0_31 = arith.constant 0 : index
      %c0_32 = arith.constant 0 : index
      %c0_33 = arith.constant 0 : index
      %53 = vector.load %arg5[%c0_30, %c0_31, %c0_32, %c0_33] : memref<1x1x3x19xf32, #tpu.memory_space<vmem>>, vector<1x1x3x19xf32>
      tpu.vector_store %arg5[%c0_30, %c0_31, %c0_32, %c0_33], %52 {strides = array<i32>} : memref<1x1x3x19xf32, #tpu.memory_space<vmem>>, vector<1x1x3x19xf32>,
    } else {
    }
    return
  }
  func.func @transform_0(%arg0: i32, %arg1: i32, %arg2: i32) -> (i32, i32, i32) {
    %c1_i32 = arith.constant 1 : i32
    %0 = arith.muli %arg1, %c1_i32 : i32
    %1 = arith.addi %0, %arg2 : i32
    %c0_i32 = arith.constant 0 : i32
    %c0_i32_0 = arith.constant 0 : i32
    return %arg0, %c0_i32, %1 : i32, i32, i32
  }
  func.func @transform_1(%arg0: i32, %arg1: i32, %arg2: i32) -> (i32, i32, i32) {
    %c1_i32 = arith.constant 1 : i32
    %0 = arith.muli %arg1, %c1_i32 : i32
    %1 = arith.addi %0, %arg2 : i32
    %c0_i32 = arith.constant 0 : i32
    %c0_i32_0 = arith.constant 0 : i32
    return %arg0, %c0_i32, %1 : i32, i32, i32
  }
  func.func @transform_2(%arg0: i32, %arg1: i32, %arg2: i32) -> (i32, i32, i32, i32) {
    %c0_i32 = arith.constant 0 : i32
    %c0_i32_0 = arith.constant 0 : i32
    %c0_i32_1 = arith.constant 0 : i32
    return %arg0, %arg1, %c0_i32, %c0_i32_0 : i32, i32, i32, i32
  }
}

</mosaic_0001>

<bundles_post_ra>
// kernel: tpu_custom_call.1
= control target key start
LH: loop header
LB: loop body
LE: loop exit
PB: predicated region body
PF: predicated region fallthrough
CT: control target
= control target key end

     0   :  { %s1127_s0 = inlined_call_operand.hbm [shape: f32[2,19,256], index: 0, kind: input, shape index: {}]   ;;  %s1128_s1 = inlined_call_operand.hbm [shape: s32[2,1,256], index: 1, kind: input, shape index: {}]   ;;  %s1129_s2 = inlined_call_operand.hbm [shape: f32[2,2,3,19], index: 2, kind: output, shape index: {}]  }
   0x1   :  { %1135 = sst [smem:[#allocation16_spill]] %s1127_s0 }
   0x2   :  { %7 = vsyncpa [#allocation4], 0 }
   0x3   :  { %9 = vsyncpa [#allocation4 + $0x1], 0 }
   0x4   :  { %10 = vsyncpa [#allocation7], 0 }
   0x5   :  { %12 = vsyncpa [#allocation7 + $0x1], 0 }
   0x6   :  { %13 = vsyncpa [#allocation5], 0 }
   0x7   :  { %15 = vsyncpa [#allocation5 + $0x1], 0  ;;  %s861_s9 = smov 0   ;;  %s863_s10 = smov 0  }
   0x8   :  { %s865_s11 = smov 0   ;;  %s867_s12 = smov 0  }
   0x9   :  { %s869_s13 = smov 0   ;;  %s871_s14 = smov 0  }
   0xa   :  { %s873_s15 = smov 0   ;;  %s875_s16 = smov 0  }
   0xb LB: > { %1136 = sst [smem:[#allocation12_spill]] %s817_s11  ;;  %s560_s17 = sadd.s32 4294967295, %s837_s16   ;;  %s837_s16 = sphi %s875_s16, %s21_s16   ;;  %s833_s15 = sphi %s873_s15, %s1159_s15   ;;  %s829_s14 = sphi %s871_s14, %s1158_s14   ;;  %s825_s13 = sphi %s869_s13, %s1157_s13   ;;  %s821_s12 = sphi %s867_s12, %s1156_s12   ;;  %s817_s11 = sphi %s865_s11, %s1151_s11   ;;  %s813_s10 = sphi %s863_s10, %s1155_s10   ;;  %s809_s9 = sphi %s861_s9, %s1154_s9  }
   0xc   : > { %s561_s18 = sadd.s32 4294967294, %s837_s16   ;;  %s36_s19 = sadd.s32 1, %s829_s14 }
   0xd   : > { %s40_s20 = sadd.s32 1, %s833_s15  ;;  %p38_p0 = scmp.ge.s32.totalorder %s36_s19, 2 }
   0xe   : > { %s51_s21 = sadd.s32 1, %s817_s11  ;;  %p58_p1 = scmp.ne.s32.totalorder %s817_s11, %s813_s10 }
   0xf   : > { %p59_p2 = scmp.eq.s32.totalorder %s837_s16, 0  ;;  %s1161_s19 = smov (%p38_p0, %s36_s19), 0 }
  0x10   : > { %1137 = sst [smem:[#allocation13_spill]] %s1161_s19  ;;  %s1163_s20 = smov (!%p38_p0, %s40_s20), %s833_s15 }
  0x11   : > { %s47_s22 = ssub.s32 %s829_s14, %s1161_s19  ;;  %p914_p3 = por %p59_p2, %p58_p1 }
  0x12   : > { %p42_p4 = scmp.ge.s32.totalorder %s1163_s20, 2  ;;  %p64_p5 = scmp.ne.s32.totalorder %s813_s10, %s809_s9 }
  0x13   : > { %p65_p6 = scmp.eq.s32.totalorder %s560_s17, 0  ;;  %p120_p7 = scmp.eq.s32.totalorder %s560_s17, 3 }
  0x14   : > { %s1165_s20 = smov (%p42_p4, %s1163_s20), 0  ;;  %p126_p10 = scmp.eq.s32.totalorder %s561_s18, 3 }
  0x15   : > { %1139 = sst [smem:[#allocation14_spill]] %s1165_s20  ;;  %p922_p8 = por %p65_p6, %p64_p5 }
  0x16   : > { %p926_p9 = por %p120_p7, %p58_p1  ;;  %s46_s26 = ssub.s32 %s833_s15, %s1165_s20 }
  0x17   : > { %s1140_s24 = scalar_select %p922_p8, 1, 0 }
  0x18   : > { %s1141_s25 = scalar_select %p926_p9, 1, 0 }
  0x19   : > { %s48_s27 = sor.u32 %s47_s22, %s46_s26  ;;  %p932_p12 = por %p126_p10, %p64_p5 }
  0x1a   : > { %p49_p11 = scmp.eq.s32.totalorder %s48_s27, 0  ;;  %p597_p13 = scmp.lt.s32.totalorder %s837_s16, 4 }
  0x1b   : > { %s1142_s28 = scalar_select %p932_p12, 1, 0 }
  0x1c   : > { %s938_s29 = sand.u32 1, %s817_s11   ;;  %s578_s4 = smul.u32 6, %s833_s15 }
  0x1d   : > { %s941_s30 = scalar_select %p49_p11, %s817_s11, %s51_s21  }
  0x1e   : > { %s577_s3 = smul.u32 24, %s938_s29  ;;  %p947_p0 = pnand %p597_p13, %p914_p3 }
  0x1f   : > { %1143 = sst [smem:[#allocation15_spill]] %s941_s30  ;;  %s156_s6 = sadd.s32 %s829_s14, %s578_s4 }
  0x20   : > { %s150_s7 = scalar_lea.vmem [#allocation3], %s577_s3  ;;  %s564_s17 = sshll.u32 %s156_s6, 7 }
  0x21   : > { %s159_s8 = sshll.u32 %s150_s7, 4  ;;  %s1145_s0 = sld [smem:[#allocation16_spill]]  ;;  %s952_s8 = int_to_ptr.vmem [resolvable:$true] %s159_s8 }
  0x22   : > { %s147_s23 = scalar_lea.sflag [#allocation4], %s938_s29  ;;  %p677_p2 = pneg %p947_p0 }
  0x27   : > { %s957_s21 = scalar_lea.hbm %s1145_s0, %s564_s17  ;;  %s680_s4 = scalar_lea.hbm %s1145_s0, 1536 }
  0x28   : > { %s675_s26 = scalar_lea.hbm %s957_s21, 384  ;;  %p681_p5 = scmp.lt.u32.totalorder %s957_s21, %s1145_s0 }
  0x29   : > { %p676_p1 = scmp.ne.s32.totalorder %s957_s21, %s675_s26  ;;  %p682_p6 = scmp.lt.u32.totalorder %s680_s4, %s675_s26 }
  0x2a   : > { %p684_p10 = scmp.lt.u32.totalorder %s675_s26, %s957_s21 }
  0x2b   : > { %p678_p3 = pnand %p677_p2, %p676_p1  ;;  %p683_p7 = por %p682_p6, %p681_p5 }
  0x2d   : > { %p679_p4 = pneg %p678_p3  ;;  %p685_p11 = por %p684_p10, %p683_p7 }
  0x2f   : > { %p686_p13 = pnand %p685_p11, %p679_p4 }
  0x31   : > { %689 = shalt.err (!%p686_p13)
}
  0x32   : > { %s690_s17 = scalar_lea.vmem %s952_s8, 384  ;;  %s839_s18 = smov [#allocation3]  }
  0x33   : > { %p691_p1 = scmp.ne.s32.totalorder %s952_s8, %s690_s17  ;;  %s695_s22 = sshll.u32 %s839_s18, 4  ;;  %s696_s22 = int_to_ptr.vmem [resolvable:$false] %s695_s22 }
  0x34   : > { %s697_s27 = scalar_lea.vmem %s696_s22, 768  ;;  %p698_p9 = scmp.lt.s32.totalorder %s952_s8, %s696_s22 }
  0x35   : > { %p693_p3 = pnand %p691_p1, %p677_p2  ;;  %p699_p5 = scmp.lt.s32.totalorder %s697_s27, %s690_s17 }
  0x37   : > { %p694_p12 = pneg %p693_p3  ;;  %p700_p6 = por %p699_p5, %p698_p9 }
  0x39   : > { %p701_p7 = pnand %p700_p6, %p694_p12 }
  0x3b   : > { %704 = shalt.err (!%p701_p7)
}
  0x3c   : > { %s840_s26 = smov 256   ;;  %s841_s3 = smov 128  }
  0x3d   : > { %s842_s4 = smov 8   ;;  %p567_p9 = scmp.ge.s32.totalorder %s837_s16, 1 }
  0x3e   : > { %589 = dma.hbm_to_vmem [thread:$0]  (!%p947_p0), %s957_s21, 384, %s952_s8, %s147_s23, %s840_s26, %s841_s3, %s842_s4  }
  0x3f   : > { %p187_p12 = scmp.lt.s32.totalorder %s837_s16, 5  ;;  %s565_s7 = sshll.u32 %s833_s15, 1 }
  0x40   : > { %s178_s17 = sadd.s32 %s829_s14, %s565_s7  ;;  %s172_s18 = scalar_lea.vmem [#allocation6], %s938_s29 }
  0x41   : > { %p989_p4 = pnand %p567_p9, %p187_p12  ;;  %s182_s22 = sshll.u32 %s172_s18, 4  ;;  %s996_s22 = int_to_ptr.vmem [resolvable:$true] %s182_s22 }
  0x42   : > { %s566_s27 = sshll.u32 %s178_s17, 4  ;;  %s170_s30 = scalar_lea.sflag [#allocation7], %s938_s29 }
  0x43   : > { %s180_s19 = scalar_lea.hbm %s1128_s1, %s566_s27  ;;  %s710_s23 = scalar_lea.hbm %s1128_s1, 64 }
  0x44   : > { %s705_s11 = scalar_lea.hbm %s180_s19, 16  ;;  %p711_p1 = scmp.lt.u32.totalorder %s180_s19, %s1128_s1 }
  0x45   : > { %p706_p10 = scmp.ne.s32.totalorder %s180_s19, %s705_s11  ;;  %p712_p3 = scmp.lt.u32.totalorder %s710_s23, %s705_s11 }
  0x46   : > { %p714_p6 = scmp.lt.u32.totalorder %s705_s11, %s180_s19 }
  0x47   : > { %p708_p11 = pnand %p706_p10, %p677_p2  ;;  %p713_p5 = por %p712_p3, %p711_p1 }
  0x49   : > { %p709_p13 = pneg %p708_p11  ;;  %p715_p7 = por %p714_p6, %p713_p5 }
  0x4b   : > { %p716_p9 = pnand %p715_p7, %p709_p13 }
  0x4d   : > { %719 = shalt.err (!%p716_p9)
}
  0x4e   : > { %s720_s0 = scalar_lea.vmem %s996_s22, 16  ;;  %s843_s20 = smov [#allocation6]  }
  0x4f   : > { %p721_p12 = scmp.ne.s32.totalorder %s996_s22, %s720_s0  ;;  %s725_s29 = sshll.u32 %s843_s20, 4  ;;  %s726_s29 = int_to_ptr.vmem [resolvable:$false] %s725_s29 }
  0x50   : > { %s727_s4 = scalar_lea.vmem %s726_s29, 32  ;;  %p728_p8 = scmp.lt.s32.totalorder %s996_s22, %s726_s29 }
  0x51   : > { %p723_p10 = pnand %p721_p12, %p677_p2  ;;  %p729_p1 = scmp.lt.s32.totalorder %s727_s4, %s720_s0 }
  0x53   : > { %p724_p11 = pneg %p723_p10  ;;  %p730_p3 = por %p729_p1, %p728_p8 }
  0x55   : > { %p731_p5 = pnand %p730_p3, %p724_p11 }
  0x57   : > { %734 = shalt.err (!%p731_p5)
}
  0x58   : > { %592 = dma.hbm_to_vmem [thread:$0]  (!%p947_p0), %s180_s19, 16, %s996_s22, %s170_s30  }
  0x59   : > { %191 = sbr.rel (%p989_p4) target bundleno = 341 (0x155), region = 28  ;;  %s1023_s11 = sand.u32 (!%p989_p4), 1, %s813_s10  }
  0x5a   : > { %s579_s7 = smul.u32 (!%p989_p4), 24, %s1023_s11  ;;  %s194_s17 = scalar_lea.sflag (!%p989_p4), [#allocation4], %s1023_s11 }
  0x5b   : > { %p1147_p2 = scmp.ne.s32.totalorder (!%p989_p4), %s1140_s24, 0 }
  0x5c   : > { %s197_s18 = scalar_lea.vmem (!%p989_p4), [#allocation3], %s579_s7 }
  0x60   : > { %796 = dma.done.wait (%p1147_p2), %s194_s17, 384  }
  0x61   : > { %798 = vsyncadd (%p1147_p2), %s194_s17, 4294966912  ;;  %s203_s19 = scalar_lea.sflag [#allocation7], %s1023_s11  ;;  %s205_s30 = scalar_lea.vmem [#allocation6], %s1023_s11 }
  0x62   : > { %800 = dma.done.wait (%p1147_p2), %s203_s19, 16  }
  0x63   : > { %802 = vsyncadd (%p1147_p2), %s203_s19, 4294967280  ;;  %v283_v0 = vlaneseq  ;;  %v844_v1 = vmov 0.0   ;;  %vm248_vm0 = vcmask 1042432   ;;  %v280_v4 = vld [vmem:[%s205_s30] sm:$0x1]  ;;  %v246_v6 = vld [vmem:[%s197_s18 + $0x8] sm:$0xff] }
  0x64   : > { %238 = vst [vmem:[#allocation2 + $0x10] sm:$0x7] %v844_v1  ;;  %241 = vst [vmem:[#allocation2 + $0x28] sm:$0x7] %v844_v1  ;;  %v245_v5 = vld [vmem:[%s197_s18] sm:$0xff]  ;;  %vm281_vm1 = vcmp.eq.s32.totalorder %v280_v4, 255 }
  0x65   : > { %244 = vst [vmem:[#allocation2 + $0x40] sm:$0x7] %v844_v1  ;;  %v1038_v2 = vshrl.u32 %v283_v0, 7  ;;  %v247_v7 = vld [vmem:[%s197_s18 + $0x10] sm:$0x7]  ;;  %v250_v8 = vmax.f32 %v245_v5, %v246_v6  ;;  %v282_v11 = vsel %vm281_vm1, 19, %v280_v4 }
  0x66   : > { %v249_v12 = vsel %vm248_vm0, %v247_v7, -inf  ;;  %v378_v4 = vand.u32 127, %v283_v0  ;;  %s568_s24 = sshll.u32 %s1023_s11, 2  ;;  %s573_s5 = sshll.u32 %s825_s13, 1  ;;  %vm388_vm5 = vcmask 130112   ;;  %vm395_vm6 = vcmask 195712  }
  0x67   : > { %v289_v3 = vsub.s32 0, %v1038_v2  ;;  %v285_v9 = vadd.s32 8, %v1038_v2  ;;  %v286_v10 = vadd.s32 16, %v1038_v2  ;;  %v251_v14 = vmax.f32 %v250_v8, %v249_v12  ;;  %s444_s6 = sadd.s32 %s821_s12, %s573_s5  ;;  %s229_s22 = scalar_lea.vmem [#allocation8], %s568_s24 }
  0x68   : > { %v390_v8 = vadd.s32 4294967280, %v378_v4  ;;  %v381_v12 = vsub.s32 %v378_v4, %v1038_v2  ;;  %vm425_vm7 = vcmask 1041409   ;;  %s574_s13 = sshll.u32 %s444_s6, 6  ;;  %s448_s27 = sshll.u32 %s229_s22, 4  ;;  %vm427_vm8 = vcmask 1042434   ;;  %s1075_s27 = int_to_ptr.vmem [resolvable:$true] %s448_s27 }
  0x69   : > { %v290_v13 = vrot.slane %v282_v11, %v289_v3  ;;  %v252_v16 = vrot.slane %v251_v14, 4  ;;  %vm430_vm9 = vcmask 149504   ;;  %s1073_s21 = scalar_lea.hbm %s1129_s2, %s574_s13  ;;  %s433_s23 = scalar_lea.sflag [#allocation5], %s1023_s11 }
  0x6a   : > { %v393_v11 = vsub.s32 %v390_v8, %v1038_v2  ;;  %s735_s26 = scalar_lea.vmem %s1075_s27, 64  ;;  %p1148_p0 = scmp.ne.s32.totalorder %s1141_s25, 0 }
  0x6b   : > { %vm291_vm2 = vcmp.eq.s32.totalorder %v1038_v2, %v290_v13  ;;  %vm292_vm3 = vcmp.eq.s32.totalorder %v285_v9, %v290_v13  ;;  %vm293_vm4 = vcmp.eq.s32.totalorder %v286_v10, %v290_v13  ;;  %v253_v20 = vmax.f32 %v251_v14, %v252_v16  ;;  %v296_v48 = vld [vmem:[#allocation2 + $0x10] sm:$0x7]  ;;  %v309_v53 = vld [vmem:[#allocation2 + $0x28] sm:$0x7]  ;;  %p736_p8 = scmp.ne.s32.totalorder %s1075_s27, %s735_s26  ;;  %s845_s3 = smov [#allocation8]  }
  0x6c   : > { %v322_v15 = vld [vmem:[#allocation2 + $0x40] sm:$0x7]  ;;  %v569_v17 = vsel %vm291_vm2, 1.0, %v844_v1  ;;  %v570_v18 = vsel %vm292_vm3, 1.0, %v844_v1  ;;  %v571_v19 = vsel %vm293_vm4, 1.0, %v844_v1  ;;  %s739_s0 = sshll.u32 %s845_s3, 4  ;;  %s740_s0 = int_to_ptr.vmem [resolvable:$false] %s739_s0 }
  0x6d   : > { %v331_v21 = vadd.f32 %v571_v19, %v322_v15  ;;  %361 = vadd.xlane.f32.xlu0 %v569_v17  ;;  %v254_v22 = vrot.slane %v253_v20, 2  ;;  %p737_p4 = pnand %p736_p8, %p1148_p0  ;;  %s741_s20 = scalar_lea.vmem %s740_s0, 128 }
  0x6e   : > { %p742_p6 = scmp.lt.s32.totalorder %s1075_s27, %s740_s0  ;;  %p743_p7 = scmp.lt.s32.totalorder %s741_s20, %s735_s26 }
  0x6f   : > { %334 = vst [vmem:[#allocation2 + $0x40] sm:$0x7] %v331_v21  ;;  %v255_v23 = vmax.f32 %v253_v20, %v254_v22  ;;  %p738_p13 = pneg %p737_p4 }
  0x70   : > { %p744_p9 = por %p743_p7, %p742_p6 }
  0x71   : > { %v256_v24 = vrot.slane %v255_v23, 1 }
  0x72   : > { %p745_p12 = pnand %p744_p9, %p738_p13 }
  0x73   : > { %v257_v25 = vmax.f32 %v255_v23, %v256_v24 }
  0x75   : > { %v258_v26 = vsub.f32 %v245_v5, %v257_v25  ;;  %v259_v27 = vsub.f32 %v246_v6, %v257_v25  ;;  %v260_v28 = vsub.f32 %v247_v7, %v257_v25  ;;  %v383_v6 = vadd.s32 4294967288, %v378_v4 }
  0x76   : > { %v346_v59 = vld [vmem:[#allocation2 + $0x40] sm:$0x7] }
  0x77   : > { %v261_v29 = vmul.f32 1.442695, %v258_v26  ;;  %v263_v30 = vmul.f32 1.442695, %v259_v27  ;;  %v265_v31 = vmul.f32 1.442695, %v260_v28  ;;  %v386_v10 = vsub.s32 %v383_v6, %v1038_v2 }
  0x78   : > { %v365_v63 = vsel %vm248_vm0, %v346_v59, 0.0 }
  0x79   : > { %667 = vpow2.f32 %v261_v29 }
  0x7a   : > { %669 = vpow2.f32 %v263_v30 }
  0x7b   : > { %671 = vpow2.f32 %v265_v31 }
  0x83   : > { %v668_v32 = vpop.eup %667 }
  0x84   : > { %v670_v33 = vpop.eup %669 }
  0x85   : > { %v672_v34 = vpop.eup %671  ;;  %v267_v35 = vadd.f32 %v670_v33, %v668_v32 }
  0x86   : > { %v268_v36 = vsel %vm248_vm0, %v672_v34, 0.0 }
  0x87   : > { %v269_v37 = vadd.f32 %v268_v36, %v267_v35 }
  0x89   : > { %v270_v38 = vrot.slane %v269_v37, 4 }
  0x8b   : > { %v271_v39 = vadd.f32 %v270_v38, %v269_v37 }
  0x8d   : > { %v272_v40 = vrot.slane %v271_v39, 2 }
  0x8f   : > { %v273_v41 = vadd.f32 %v272_v40, %v271_v39 }
  0x91   : > { %v274_v42 = vrot.slane %v273_v41, 1 }
  0x93   : > { %v275_v43 = vadd.f32 %v274_v42, %v273_v41 }
  0x95   : > { %673 = vrcp.f32 %v275_v43 }
  0x9f   : > { %v674_v44 = vpop.eup %673 }
  0xa0   : > { %v277_v45 = vmul.f32 %v674_v44, %v668_v32  ;;  %v278_v46 = vmul.f32 %v674_v44, %v670_v33  ;;  %v279_v47 = vmul.f32 %v674_v44, %v672_v34 }
  0xa2   : > { %v297_v49 = vsel %vm291_vm2, %v277_v45, 0.0  ;;  %v310_v50 = vmul.f32 %v277_v45, %v277_v45  ;;  %v298_v51 = vsel %vm292_vm3, %v278_v46, 0.0  ;;  %v311_v52 = vmul.f32 %v278_v46, %v278_v46 }
  0xa3   : > { %v299_v54 = vsel %vm293_vm4, %v279_v47, 0.0  ;;  %v312_v55 = vmul.f32 %v279_v47, %v279_v47  ;;  %347 = vadd.xlane.f32.xlu0 %v297_v49 }
  0xa4   : > { %v302_v56 = vadd.f32 %v299_v54, %v296_v48  ;;  %354 = vadd.xlane.f32.xlu1 %v310_v50 }
  0xa5   : > { %v315_v57 = vadd.f32 %v312_v55, %v309_v53 }
  0xa6   : > { %305 = vst [vmem:[#allocation2 + $0x10] sm:$0x7] %v302_v56 }
  0xa7   : > { %318 = vst [vmem:[#allocation2 + $0x28] sm:$0x7] %v315_v57  ;;  %349 = vadd.xlane.f32.xlu0 %v298_v51 }
  0xa8   : > { %356 = vadd.xlane.f32.xlu1 %v311_v52 }
  0xad   : > { %v340_v58 = vld [vmem:[#allocation2 + $0x10] sm:$0x7] }
  0xae   : > { %v351_v60 = vsel %vm248_vm0, %v340_v58, 0.0  ;;  %v343_v61 = vld [vmem:[#allocation2 + $0x28] sm:$0x7] }
  0xaf   : > { %352 = vadd.xlane.f32.xlu0 %v351_v60  ;;  %v358_v62 = vsel %vm248_vm0, %v343_v61, 0.0 }
  0xb0   : > { %359 = vadd.xlane.f32.xlu1 %v358_v62 }
  0xb3   : > { %366 = vadd.xlane.f32.xlu0 %v365_v63 }
  0xb4   : > { %363 = vadd.xlane.f32.xlu1 %v570_v18 }
  0xfa   : > { %v362_v1 = vpop.xlane.xlu0 %361 }
  0xfb   : > { %v414_v24 = vrot.slane %v362_v1, %v381_v12 }
 0x130   : > { %v348_v3 = vpop.xlane.xlu0 %347 }
 0x131   : > { %v355_v5 = vpop.xlane.xlu1 %354  ;;  %v382_v14 = vrot.slane %v348_v3, %v381_v12 }
 0x132   : > { %v400_v19 = vrot.slane %v355_v5, %v381_v12 }
 0x134   : > { %v350_v7 = vpop.xlane.xlu0 %349 }
 0x135   : > { %v357_v9 = vpop.xlane.xlu1 %356  ;;  %v387_v15 = vrot.slane %v350_v7, %v386_v10 }
 0x136   : > { %v404_v16 = vrot.slane %v357_v9, %v386_v10 }
 0x137   : > { %v389_v21 = vsel %vm388_vm5, %v387_v15, %v382_v14 }
 0x138   : > { %v405_v22 = vsel %vm388_vm5, %v404_v16, %v400_v19 }
 0x13c   : > { %v353_v13 = vpop.xlane.xlu0 %352 }
 0x13d   : > { %v360_v17 = vpop.xlane.xlu1 %359  ;;  %v394_v0 = vrot.slane %v353_v13, %v393_v11 }
 0x13e   : > { %v409_v18 = vrot.slane %v360_v17, %v393_v11 }
 0x13f   : > { %v396_v25 = vsel %vm395_vm6, %v394_v0, %v389_v21 }
 0x140   : > { %v367_v20 = vpop.xlane.xlu0 %366  ;;  %v410_v26 = vsel %vm395_vm6, %v409_v18, %v405_v22 }
 0x141   : > { %v364_v2 = vpop.xlane.xlu1 %363  ;;  %v423_v23 = vrot.slane %v367_v20, %v393_v11  ;;  %v426_v29 = vsel %vm425_vm7, %v410_v26, %v396_v25 }
 0x142   : > { %v418_v27 = vrot.slane %v364_v2, %v386_v10 }
 0x144   : > { %v419_v28 = vsel %vm388_vm5, %v418_v27, %v414_v24 }
 0x145   : > { %v424_v30 = vsel %vm395_vm6, %v423_v23, %v419_v28 }
 0x146   : > { %v428_v31 = vsel %vm427_vm8, %v424_v30, %v426_v29 }
 0x147   : > { %431 = vst.msk [vmem:[%s229_s22] sm:$0x7] %vm430_vm9, %v428_v31 }
 0x148   : > { %748 = shalt.err (!%p745_p12)
}
 0x149   : > { %s749_s29 = scalar_lea.hbm %s1073_s21, 64  ;;  %s753_s7 = scalar_lea.hbm %s1129_s2, 256 }
 0x14a   : > { %p750_p10 = scmp.ne.s32.totalorder %s1073_s21, %s749_s29  ;;  %p754_p3 = scmp.lt.u32.totalorder %s1073_s21, %s1129_s2 }
 0x14b   : > { %p755_p5 = scmp.lt.u32.totalorder %s753_s7, %s749_s29  ;;  %p757_p8 = scmp.lt.u32.totalorder %s749_s29, %s1073_s21 }
 0x14c   : > { %p751_p11 = pnand %p750_p10, %p1148_p0 }
 0x14d   : > { %p756_p2 = por %p755_p5, %p754_p3 }
 0x14e   : > { %p752_p1 = pneg %p751_p11 }
 0x14f   : > { %p758_p4 = por %p757_p8, %p756_p2 }
 0x151   : > { %p759_p13 = pnand %p758_p4, %p752_p1 }
 0x153   : > { %762 = shalt.err (!%p759_p13)
}
 0x154   : > { %584 = dma.vmem_to_hbm [thread:$0]  (%p1148_p0), %s1075_s27, 64, %s1073_s21, %s433_s23  }
 0x155 PF: > { %p598_p6 = scmp.ge.s32.totalorder %s837_s16, 2  ;;  %s460_s19 = sand.u32 1, %s809_s9  }
 0x156   : > { %p1149_p7 = scmp.ne.s32.totalorder %s1142_s28, 0  ;;  %s461_s30 = scalar_lea.sflag [#allocation5], %s460_s19 }
 0x158   : > { %p594_p9 = pnand %p598_p6, %p1149_p7 }
 0x15a   : > { %804 = dma.done.wait (!%p594_p9), %s461_s30, 64  }
 0x15b   : > { %806 = vsyncadd (!%p594_p9), %s461_s30, 4294967232  ;;  %s21_s16 = sadd.s32 1, %s837_s16   ;;  %s1150_s24 = sld [smem:[#allocation12_spill]] }
 0x15c   : > { %p18_p12 = scmp.ge.s32.totalorder %s21_s16, 6   ;;  %s1151_s11 = sld [smem:[#allocation15_spill]] }
 0x15d   : > { %s1152_s25 = sld [smem:[#allocation13_spill]]  ;;  %s1153_s5 = sld [smem:[#allocation14_spill]] }
 0x15e   : > { %s1154_s9 = smov %s813_s10  ;;  %s1156_s12 = smov %s829_s14 }
 0x15f   : > { %s1157_s13 = smov %s833_s15  ;;  %20 = sbr.rel (!%p18_p12) target bundleno = 11 (0xb), region = 96 }
 0x161   : > { %s1155_s10 = smov %s1150_s24 }
 0x163   : > { %s1158_s14 = smov %s1152_s25  ;;  %s1159_s15 = smov %s1153_s5 }
 0x166   :  { %466 = vsyncpa [#allocation4], 1 }
 0x167   :  { %468 = vsyncpa [#allocation4 + $0x1], 1 }
 0x168   :  { %469 = vsyncpa [#allocation7], 1 }
 0x169   :  { %471 = vsyncpa [#allocation7 + $0x1], 1 }
 0x16a   :  { %472 = vsyncpa [#allocation5], 1 }
 0x16b   :  { %474 = vsyncpa [#allocation5 + $0x1], 1 }

</bundles_post_ra>
